<compile_context>
chip_gen: v7x
topology: tpu7x:2x2x1
jax: 0.10.0
libtpu: 0.0.40
codegen_flags: <defaults>
</compile_context>

<pallas_src>
import functools

import jax
import jax.numpy as jnp
from jax.experimental import pallas as pl
from jax.experimental.pallas import tpu as pltpu

D_PAD = 128          # padded feature width (lane dim)
BN_EPS = 1e-5
NEG_SLOPE = 0.1

# rows of the packed (8,128) vector block
ROW_W1, ROW_G1, ROW_BE1, ROW_G2, ROW_BE2, ROW_BH = 0, 1, 2, 3, 4, 5


def _disc_kernel(x_ref, vec_ref, w3_ref, wh_ref, out_ref):
    """x_ref: (N,1); vec_ref: (8,128) packed per-lane vectors;
    w3_ref: (128,128) fc3 W^T; wh_ref: (128,128) fused-head W^T; out_ref: (N,128)."""
    x = x_ref[...].astype(jnp.float32)                    # (N, 1)

    w1 = vec_ref[ROW_W1:ROW_W1 + 1, :]                    # (1, 128) spectral-normalized fc1 weight
    g1 = vec_ref[ROW_G1:ROW_G1 + 1, :]
    be1 = vec_ref[ROW_BE1:ROW_BE1 + 1, :]
    g2 = vec_ref[ROW_G2:ROW_G2 + 1, :]
    be2 = vec_ref[ROW_BE2:ROW_BE2 + 1, :]
    bh = vec_ref[ROW_BH:ROW_BH + 1, :]

    # ---- fc1 + batch_norm1 (training-mode stats) fused in closed form ----
    # h_ij = x_i * w1_j  =>  mean_j = mu_x*w1_j, var_j = var_x*w1_j^2, hence
    #   bn1(h) = x*a + t,  a = w1*g1*rsqrt(w1^2*var_x+eps),  t = be1 - mu_x*a.
    # (fc1 bias is a per-column constant and cancels exactly in training-mode BN.)
    mu_x = jnp.mean(x, axis=0, keepdims=True)                                   # (1,1)
    var_x = jnp.maximum(jnp.mean(x * x, axis=0, keepdims=True) - mu_x * mu_x, 0.0)
    a = w1 * g1 * jax.lax.rsqrt(w1 * w1 * var_x + BN_EPS)                       # (1,128)
    t1 = be1 - mu_x * a
    h = x * a + t1                                                              # (N,128)
    h = jnp.where(h >= 0, h, NEG_SLOPE * h)               # leaky_relu(0.1)

    # ---- fc3 (bias omitted: cancelled exactly by the following training-mode BN) ----
    h = jnp.dot(h, w3_ref[...], preferred_element_type=jnp.float32)

    # ---- batch_norm2: one-pass stats (var = E[h^2]-mean^2) folded into an FMA ----
    mean = jnp.mean(h, axis=0, keepdims=True)
    var = jnp.maximum(jnp.mean(h * h, axis=0, keepdims=True) - mean * mean, 0.0)
    s = g2 * jax.lax.rsqrt(var + BN_EPS)     # g2 == 0 in padded lanes masks rsqrt(eps)
    t2 = be2 - mean * s
    h = h * s + t2
    feature = jnp.where(h >= 0, h, NEG_SLOPE * h)

    # ---- fused output heads: fc2 / reg / reg_mi in one matmul ----
    out_ref[...] = jnp.dot(feature, wh_ref[...],
                           preferred_element_type=jnp.float32) + bh


def _pad2(a, rows, cols):
    return jnp.pad(a, ((0, rows - a.shape[0]), (0, cols - a.shape[1])))


def _spectral_normalize(w, u):
    """One power iteration (PyTorch SpectralNorm wrapper semantics). w: (out, in)."""
    v = w.T @ u
    v = v / (jnp.linalg.norm(v) + 1e-12)
    u2 = w @ v
    u2 = u2 / (jnp.linalg.norm(u2) + 1e-12)
    sigma = u2 @ (w @ v)
    return w / sigma


def _sn_rank1(w):
    """Exact spectral normalization for a rank-1 weight: sigma == ||w||_2."""
    return w / (jnp.linalg.norm(w) + 1e-12)


def make_params(key, d=10, input_size=1, output_size=1):
    ks = jax.random.split(key, 12)
    params = {
        # raw Linear weights (out, in); biases are zero-filled per __initialize_weights
        "w1": jax.random.normal(ks[0], (d, input_size), jnp.float32) * 0.5,
        "u1": jax.random.normal(ks[1], (d,), jnp.float32),
        "b1": jnp.zeros((d,), jnp.float32),
        "w3": jax.random.normal(ks[2], (d, d), jnp.float32) * 0.5,
        "u3": jax.random.normal(ks[3], (d,), jnp.float32),
        "b3": jnp.zeros((d,), jnp.float32),
        "w2": jax.random.normal(ks[4], (output_size, d), jnp.float32) * 0.5,
        "u2": jax.random.normal(ks[5], (output_size,), jnp.float32),
        "b2": jnp.zeros((output_size,), jnp.float32),
        "wr": jax.random.normal(ks[6], (output_size, d), jnp.float32) * 0.5,
        "ur": jax.random.normal(ks[7], (output_size,), jnp.float32),
        "br": jnp.zeros((output_size,), jnp.float32),
        "wm": jax.random.normal(ks[8], (output_size, d), jnp.float32) * 0.5,
        "um": jax.random.normal(ks[9], (output_size,), jnp.float32),
        "bm": jnp.zeros((output_size,), jnp.float32),
        # BatchNorm1d defaults: weight=1, bias=0
        "g1": jnp.ones((d,), jnp.float32), "be1": jnp.zeros((d,), jnp.float32),
        "g2": jnp.ones((d,), jnp.float32), "be2": jnp.zeros((d,), jnp.float32),
    }
    return params


def _forward_impl(params, x):
    """x: (N, 1) float32 (module's input_size=1)."""
    n, input_size = x.shape
    assert input_size == 1, "kernel specializes fc1 for input_size == 1"
    d = params["w3"].shape[0]
    o = params["w2"].shape[0]
    assert 3 * o <= D_PAD and d <= D_PAD

    # --- spectral normalization (wrapper-side param preprocessing) ---
    # rank-1 weights: sigma == L2 norm exactly, no power iteration needed.
    w1 = _sn_rank1(params["w1"])                                  # (d, 1)
    w2 = _sn_rank1(params["w2"]) if o == 1 else _spectral_normalize(params["w2"], params["u2"])
    wr = _sn_rank1(params["wr"]) if o == 1 else _spectral_normalize(params["wr"], params["ur"])
    wm = _sn_rank1(params["wm"]) if o == 1 else _spectral_normalize(params["wm"], params["um"])
    # fc3 is (d, d): keep the single per-forward power iteration (PyTorch semantics).
    w3 = _spectral_normalize(params["w3"], params["u3"])          # (d, d)

    # --- packed (8,128) per-lane vector block (padded lanes MUST stay zero) ---
    vecs = jnp.zeros((8, D_PAD), jnp.float32)
    vecs = vecs.at[ROW_W1, :d].set(w1[:, 0])               # fc1 weight as a row
    vecs = vecs.at[ROW_G1, :d].set(params["g1"])
    vecs = vecs.at[ROW_BE1, :d].set(params["be1"])
    vecs = vecs.at[ROW_G2, :d].set(params["g2"])
    vecs = vecs.at[ROW_BE2, :d].set(params["be2"])
    head_bias = jnp.concatenate([params["b2"], params["br"], params["bm"]])
    vecs = vecs.at[ROW_BH, :3 * o].set(head_bias)

    # --- fc3 weight (transposed) and fused head weight (transposed), lane-padded ---
    w3p = _pad2(w3.T, D_PAD, D_PAD)
    wh = jnp.concatenate([w2.T, wr.T, wm.T], axis=1)       # (d, 3*o), spectral scales folded in
    whp = _pad2(wh, D_PAD, D_PAD)

    vmem = pl.BlockSpec(memory_space=pltpu.MemorySpace.VMEM)
    out_p = pl.pallas_call(
        _disc_kernel,
        out_shape=jax.ShapeDtypeStruct((n, D_PAD), jnp.float32),
        in_specs=[vmem, vmem, vmem, vmem],
        out_specs=vmem,
        # Pin the VMEM budget explicitly (portable across v5e/v6e/v7x; v7x has 64 MiB).
        compiler_params=pltpu.CompilerParams(vmem_limit_bytes=32 * 1024 * 1024),
    )(x, vecs, w3p, whp)

    return out_p[:, 0:o], out_p[:, o:2 * o], out_p[:, 2 * o:3 * o]


@functools.partial(jax.jit, static_argnums=())
def discriminator_forward(params, x, noise=None):
    """Matches Discriminator.forward(input, noise); `noise` is unused, as in PyTorch."""
    del noise
    return _forward_impl(params, x)


def _reference_forward(params, x):
    """Pure-JAX reference with full PyTorch-style semantics (for the sanity check)."""
    w1 = _spectral_normalize(params["w1"], params["u1"])
    w3 = _spectral_normalize(params["w3"], params["u3"])
    w2 = _spectral_normalize(params["w2"], params["u2"])
    wr = _spectral_normalize(params["wr"], params["ur"])
    wm = _spectral_normalize(params["wm"], params["um"])

    def bn(h, g, b):
        m = h.mean(0, keepdims=True)
        v = ((h - m) ** 2).mean(0, keepdims=True)
        return (h - m) / jnp.sqrt(v + BN_EPS) * g + b

    def lrelu(h):
        return jnp.where(h >= 0, h, NEG_SLOPE * h)

    h = x @ w1.T + params["b1"]
    h = lrelu(bn(h, params["g1"], params["be1"]))
    h = h @ w3.T + params["b3"]
    feat = lrelu(bn(h, params["g2"], params["be2"]))
    return (feat @ w2.T + params["b2"],
            feat @ wr.T + params["br"],
            feat @ wm.T + params["bm"])


if __name__ == "__main__":
    key = jax.random.PRNGKey(0)
    k_param, k_x, k_noise = jax.random.split(key, 3)

    N, INPUT_SIZE, D, OUTPUT_SIZE = 8, 1, 10, 1
    params = make_params(k_param, d=D, input_size=INPUT_SIZE, output_size=OUTPUT_SIZE)

    x = jax.random.normal(k_x, (N, INPUT_SIZE), jnp.float32)
    noise = jax.random.normal(k_noise, (N, INPUT_SIZE), jnp.float32)  # unused, as in PyTorch forward

    out, reg_out, reg_out_mi = discriminator_forward(params, x, noise)
    jax.block_until_ready((out, reg_out, reg_out_mi))

    # sanity check against the pure-JAX reference
    ref = _reference_forward(params, x)
    for got, want in zip((out, reg_out, reg_out_mi), ref):
        assert got.shape == (N, OUTPUT_SIZE)
        assert jnp.allclose(got, want, atol=1e-4, rtol=1e-4), "mismatch vs reference"

    print("KERNEL_OK")
</pallas_src>

<mosaic_0001>
module attributes {stable_mosaic.version = 11 : i64} {
  func.func @_disc_kernel(%arg0: memref<8x1xf32, #tpu.memory_space<vmem>>, %arg1: memref<8x128xf32, #tpu.memory_space<vmem>>, %arg2: memref<128x128xf32, #tpu.memory_space<vmem>>, %arg3: memref<128x128xf32, #tpu.memory_space<vmem>>, %arg4: memref<8x128xf32, #tpu.memory_space<vmem>>) attributes {dimension_semantics = [], scalar_prefetch = 0 : i64, scratch_operands = 0 : i64, tpu.core_type = #tpu.core_type<tc>} {
    %c0 = arith.constant 0 : index
    %c0_0 = arith.constant 0 : index
    %0 = vector.load %arg0[%c0, %c0_0] : memref<8x1xf32, #tpu.memory_space<vmem>>, vector<8x1xf32>
    %c0_1 = arith.constant 0 : index
    %c0_2 = arith.constant 0 : index
    %1 = vector.load %arg1[%c0_1, %c0_2] : memref<8x128xf32, #tpu.memory_space<vmem>>, vector<1x128xf32>
    %c1 = arith.constant 1 : index
    %c0_3 = arith.constant 0 : index
    %2 = vector.load %arg1[%c1, %c0_3] : memref<8x128xf32, #tpu.memory_space<vmem>>, vector<1x128xf32>
    %c2 = arith.constant 2 : index
    %c0_4 = arith.constant 0 : index
    %3 = vector.load %arg1[%c2, %c0_4] : memref<8x128xf32, #tpu.memory_space<vmem>>, vector<1x128xf32>
    %c3 = arith.constant 3 : index
    %c0_5 = arith.constant 0 : index
    %4 = vector.load %arg1[%c3, %c0_5] : memref<8x128xf32, #tpu.memory_space<vmem>>, vector<1x128xf32>
    %c4 = arith.constant 4 : index
    %c0_6 = arith.constant 0 : index
    %5 = vector.load %arg1[%c4, %c0_6] : memref<8x128xf32, #tpu.memory_space<vmem>>, vector<1x128xf32>
    %c5 = arith.constant 5 : index
    %c0_7 = arith.constant 0 : index
    %6 = vector.load %arg1[%c5, %c0_7] : memref<8x128xf32, #tpu.memory_space<vmem>>, vector<1x128xf32>
    %cst = arith.constant dense<0.000000e+00> : vector<1xf32>
    %7 = vector.multi_reduction <add>, %0, %cst [0] : vector<8x1xf32> to vector<1xf32>
    %8 = vector.shape_cast %7 : vector<1xf32> to vector<1x1xf32>
    %cst_8 = arith.constant 8.000000e+00 : f32
    %9 = vector.broadcast %cst_8 : f32 to vector<1x1xf32>
    %10 = arith.divf %8, %9 : vector<1x1xf32>
    %11 = arith.mulf %0, %0 : vector<8x1xf32>
    %cst_9 = arith.constant dense<0.000000e+00> : vector<1xf32>
    %12 = vector.multi_reduction <add>, %11, %cst_9 [0] : vector<8x1xf32> to vector<1xf32>
    %13 = vector.shape_cast %12 : vector<1xf32> to vector<1x1xf32>
    %cst_10 = arith.constant 8.000000e+00 : f32
    %14 = vector.broadcast %cst_10 : f32 to vector<1x1xf32>
    %15 = arith.divf %13, %14 : vector<1x1xf32>
    %16 = arith.mulf %10, %10 : vector<1x1xf32>
    %17 = arith.subf %15, %16 : vector<1x1xf32>
    %cst_11 = arith.constant 0.000000e+00 : f32
    %18 = vector.broadcast %cst_11 : f32 to vector<1x1xf32>
    %19 = arith.maximumf %17, %18 : vector<1x1xf32>
    %20 = arith.mulf %1, %2 : vector<1x128xf32>
    %21 = arith.mulf %1, %1 : vector<1x128xf32>
    %22 = vector.broadcast %19 : vector<1x1xf32> to vector<1x128xf32>
    %23 = arith.mulf %21, %22 : vector<1x128xf32>
    %cst_12 = arith.constant 9.99999974E-6 : f32
    %24 = vector.broadcast %cst_12 : f32 to vector<1x128xf32>
    %25 = arith.addf %23, %24 : vector<1x128xf32>
    %26 = math.rsqrt %25 : vector<1x128xf32>
    %27 = arith.mulf %20, %26 : vector<1x128xf32>
    %28 = vector.broadcast %10 : vector<1x1xf32> to vector<1x128xf32>
    %29 = arith.mulf %28, %27 : vector<1x128xf32>
    %30 = arith.subf %3, %29 : vector<1x128xf32>
    %31 = vector.broadcast %0 : vector<8x1xf32> to vector<8x128xf32>
    %32 = vector.broadcast %27 : vector<1x128xf32> to vector<8x128xf32>
    %33 = arith.mulf %31, %32 : vector<8x128xf32>
    %34 = vector.broadcast %30 : vector<1x128xf32> to vector<8x128xf32>
    %35 = arith.addf %33, %34 : vector<8x128xf32>
    %cst_13 = arith.constant 0.000000e+00 : f32
    %36 = vector.broadcast %cst_13 : f32 to vector<8x128xf32>
    %37 = arith.cmpf oge, %35, %36 : vector<8x128xf32>
    %cst_14 = arith.constant 1.000000e-01 : f32
    %38 = vector.broadcast %cst_14 : f32 to vector<8x128xf32>
    %39 = arith.mulf %38, %35 : vector<8x128xf32>
    %40 = arith.select %37, %35, %39 : vector<8x128xi1>, vector<8x128xf32>
    %c0_15 = arith.constant 0 : index
    %c0_16 = arith.constant 0 : index
    %41 = vector.load %arg2[%c0_15, %c0_16] : memref<128x128xf32, #tpu.memory_space<vmem>>, vector<128x128xf32>
    %cst_17 = arith.constant dense<0.000000e+00> : vector<8x128xf32>
    %42 = tpu.matmul %40, %41, %cst_17 {dimension_numbers = #tpu.dot_dimension_numbers<[1], [0], [0], [1], [0, 0, 1, 1], [], []>} : vector<8x128xf32>, vector<128x128xf32>, vector<8x128xf32> -> vector<8x128xf32>
    %cst_18 = arith.constant dense<0.000000e+00> : vector<128xf32>
    %43 = vector.multi_reduction <add>, %42, %cst_18 [0] : vector<8x128xf32> to vector<128xf32>
    %44 = vector.shape_cast %43 : vector<128xf32> to vector<1x128xf32>
    %cst_19 = arith.constant 8.000000e+00 : f32
    %45 = vector.broadcast %cst_19 : f32 to vector<1x128xf32>
    %46 = arith.divf %44, %45 : vector<1x128xf32>
    %47 = arith.mulf %42, %42 : vector<8x128xf32>
    %cst_20 = arith.constant dense<0.000000e+00> : vector<128xf32>
    %48 = vector.multi_reduction <add>, %47, %cst_20 [0] : vector<8x128xf32> to vector<128xf32>
    %49 = vector.shape_cast %48 : vector<128xf32> to vector<1x128xf32>
    %cst_21 = arith.constant 8.000000e+00 : f32
    %50 = vector.broadcast %cst_21 : f32 to vector<1x128xf32>
    %51 = arith.divf %49, %50 : vector<1x128xf32>
    %52 = arith.mulf %46, %46 : vector<1x128xf32>
    %53 = arith.subf %51, %52 : vector<1x128xf32>
    %cst_22 = arith.constant 0.000000e+00 : f32
    %54 = vector.broadcast %cst_22 : f32 to vector<1x128xf32>
    %55 = arith.maximumf %53, %54 : vector<1x128xf32>
    %cst_23 = arith.constant 9.99999974E-6 : f32
    %56 = vector.broadcast %cst_23 : f32 to vector<1x128xf32>
    %57 = arith.addf %55, %56 : vector<1x128xf32>
    %58 = math.rsqrt %57 : vector<1x128xf32>
    %59 = arith.mulf %4, %58 : vector<1x128xf32>
    %60 = arith.mulf %46, %59 : vector<1x128xf32>
    %61 = arith.subf %5, %60 : vector<1x128xf32>
    %62 = vector.broadcast %59 : vector<1x128xf32> to vector<8x128xf32>
    %63 = arith.mulf %42, %62 : vector<8x128xf32>
    %64 = vector.broadcast %61 : vector<1x128xf32> to vector<8x128xf32>
    %65 = arith.addf %63, %64 : vector<8x128xf32>
    %cst_24 = arith.constant 0.000000e+00 : f32
    %66 = vector.broadcast %cst_24 : f32 to vector<8x128xf32>
    %67 = arith.cmpf oge, %65, %66 : vector<8x128xf32>
    %cst_25 = arith.constant 1.000000e-01 : f32
    %68 = vector.broadcast %cst_25 : f32 to vector<8x128xf32>
    %69 = arith.mulf %68, %65 : vector<8x128xf32>
    %70 = arith.select %67, %65, %69 : vector<8x128xi1>, vector<8x128xf32>
    %c0_26 = arith.constant 0 : index
    %c0_27 = arith.constant 0 : index
    %71 = vector.load %arg3[%c0_26, %c0_27] : memref<128x128xf32, #tpu.memory_space<vmem>>, vector<128x128xf32>
    %cst_28 = arith.constant dense<0.000000e+00> : vector<8x128xf32>
    %72 = tpu.matmul %70, %71, %cst_28 {dimension_numbers = #tpu.dot_dimension_numbers<[1], [0], [0], [1], [0, 0, 1, 1], [], []>} : vector<8x128xf32>, vector<128x128xf32>, vector<8x128xf32> -> vector<8x128xf32>
    %73 = vector.broadcast %6 : vector<1x128xf32> to vector<8x128xf32>
    %74 = arith.addf %72, %73 : vector<8x128xf32>
    %c0_29 = arith.constant 0 : index
    %c0_30 = arith.constant 0 : index
    %75 = vector.load %arg4[%c0_29, %c0_30] : memref<8x128xf32, #tpu.memory_space<vmem>>, vector<8x128xf32>
    tpu.vector_store %arg4[%c0_29, %c0_30], %74 {strides = array<i32>} : memref<8x128xf32, #tpu.memory_space<vmem>>, vector<8x128xf32>,
    return
  }
}

</mosaic_0001>

<bundles_post_ra>
// kernel: discriminator_forward.1
= control target key start
LH: loop header
LB: loop body
LE: loop exit
PB: predicated region body
PF: predicated region fallthrough
CT: control target
= control target key end

     0   :  { %vm24_vm0 = vcmask 7168   ;;  %v462_v0 = vmov 0   ;;  %v463_v6 = vmov 0.0|0.0   ;;  %vm464_vm1 = vmmov 0   ;;  %s635_s0 = inlined_call_operand.vmem [shape: f32[8,1], index: 0, kind: input, shape index: {}]   ;;  %s636_s2 = inlined_call_operand.vmem [shape: f32[128,128], index: 2, kind: input, shape index: {}]   ;;  %s637_s1 = inlined_call_operand.vmem [shape: f32[8,128], index: 1, kind: input, shape index: {}]   ;;  %s638_s3 = inlined_call_operand.vmem [shape: f32[128,128], index: 3, kind: input, shape index: {}]   ;;  %s639_s4 = inlined_call_operand.vmem [shape: f32[8,128], index: 4, kind: output, shape index: {}]  }
   0x1   :  { %456 = vset.pattern.permute.xlu0 %v462_v0  ;;  %v17_v1 = vld [vmem:[%s635_s0] sm:$0xff]  ;;  %457 = vset.pattern.permute.xlu1 %v462_v0  ;;  %v83_v3 = vld [vmem:[%s636_s2 + $0x8] sm:$0xff]  ;;  %v84_v26 = vld [vmem:[%s636_s2 + $0x10] sm:$0xff]  ;;  %v465_v47 = vmov 0.0   ;;  %v69_v53 = vlaneseq }
   0x2   :  { %v82_v2 = vld [vmem:[%s636_s2] sm:$0xff]  ;;  %v25_v4 = vsel %vm24_vm0, %v17_v1, 0.0  ;;  %v34_v5 = vmul.f32 %v17_v1, %v17_v1  ;;  %66 = vperm.xlu1 %457, %v17_v1   ;;  %404 = vmatprep.subr.bf16.mxu0 %v463_v6  ;;  %v85_v27 = vld [vmem:[%s636_s2 + $0x18] sm:$0xff]  ;;  %v87_v30 = vld [vmem:[%s636_s2 + $0x28] sm:$0xff] }
   0x3   :  { %v405_v7 = vpack.c.bf16 %v83_v3, %v82_v2  ;;  %v26_v8 = vrot.slane %v25_v4, 4  ;;  %428 = vmatprep.subr.bf16.mxu1 %v463_v6  ;;  %v408_v28 = vpack.c.bf16 %v85_v27, %v84_v26  ;;  %v86_v29 = vld [vmem:[%s636_s2 + $0x20] sm:$0xff]  ;;  %v88_v32 = vld [vmem:[%s636_s2 + $0x30] sm:$0xff]  ;;  %v89_v33 = vld [vmem:[%s636_s2 + $0x38] sm:$0xff]  ;;  %366 = vmatprep.mubr.msk.f32.mxu0 %vm464_vm1, %v465_v47  ;;  %v70_v55 = vshrl.u32 %v69_v53, 7 }
   0x4   :  { %v35_v9 = vsel %vm24_vm0, %v34_v5, 0.0  ;;  %v411_v31 = vpack.c.bf16 %v87_v30, %v86_v29  ;;  %v414_v34 = vpack.c.bf16 %v89_v33, %v88_v32  ;;  %v90_v35 = vld [vmem:[%s636_s2 + $0x40] sm:$0xff]  ;;  %v91_v36 = vld [vmem:[%s636_s2 + $0x48] sm:$0xff]  ;;  %v92_v38 = vld [vmem:[%s636_s2 + $0x50] sm:$0xff]  ;;  %401 = vmatprep.mubr.msk.f32.mxu1 %vm464_vm1, %v465_v47 }
   0x5   :  { %406 = vmatpush3.bf16.msra.mxu0 %v405_v7  ;;  %v27_v10 = vadd.f32 %v26_v8, %v25_v4  ;;  %v36_v11 = vrot.slane %v35_v9, 4  ;;  %v417_v37 = vpack.c.bf16 %v91_v36, %v90_v35  ;;  %v93_v39 = vld [vmem:[%s636_s2 + $0x58] sm:$0xff]  ;;  %v94_v41 = vld [vmem:[%s636_s2 + $0x60] sm:$0xff]  ;;  %v95_v42 = vld [vmem:[%s636_s2 + $0x68] sm:$0xff]  ;;  %v559_v57 = vsub.s32 0, %v70_v55 }
   0x6   :  { %407 = vmatprep.subr.bf16.mxu0 %v463_v6  ;;  %v420_v40 = vpack.c.bf16 %v93_v39, %v92_v38  ;;  %v423_v43 = vpack.c.bf16 %v95_v42, %v94_v41  ;;  %v96_v44 = vld [vmem:[%s636_s2 + $0x70] sm:$0xff]  ;;  %v97_v45 = vld [vmem:[%s636_s2 + $0x78] sm:$0xff]  ;;  %v18_v48 = vld [vmem:[%s637_s1] sm:$0x1] }
   0x7   :  { %v28_v12 = vrot.slane %v27_v10, 2  ;;  %v37_v13 = vadd.f32 %v36_v11, %v35_v9  ;;  %v426_v46 = vpack.c.bf16 %v97_v45, %v96_v44  ;;  %v47_v49 = vmul.f32 %v18_v48, %v18_v48  ;;  %v19_v54 = vld [vmem:[%s637_s1 + $0x1] sm:$0x1]  ;;  %v20_v60 = vld [vmem:[%s637_s1 + $0x2] sm:$0x1]  ;;  %v205_v9 = vld [vmem:[%s638_s3 + $0x8] sm:$0xff] }
   0x8   :  { %v46_v56 = vmul.f32 %v19_v54, %v18_v48  ;;  %v204_v8 = vld [vmem:[%s638_s3] sm:$0xff]  ;;  %v206_v11 = vld [vmem:[%s638_s3 + $0x10] sm:$0xff]  ;;  %v217_v27 = vld [vmem:[%s638_s3 + $0x68] sm:$0xff] }
   0x9   :  { %v29_v14 = vadd.f32 %v28_v12, %v27_v10  ;;  %v38_v15 = vrot.slane %v37_v13, 2  ;;  %409 = vmatpush3.bf16.msra.mxu0 %v408_v28  ;;  %v429_v10 = vpack.c.bf16 %v205_v9, %v204_v8  ;;  %v207_v12 = vld [vmem:[%s638_s3 + $0x18] sm:$0xff]  ;;  %v216_v26 = vld [vmem:[%s638_s3 + $0x60] sm:$0xff]  ;;  %v218_v29 = vld [vmem:[%s638_s3 + $0x70] sm:$0xff] }
   0xa   :  { %410 = vmatprep.subr.bf16.mxu0 %v463_v6  ;;  %v447_v28 = vpack.c.bf16 %v217_v27, %v216_v26  ;;  %v219_v30 = vld [vmem:[%s638_s3 + $0x78] sm:$0xff]  ;;  %v22_v55 = vld [vmem:[%s637_s1 + $0x4] sm:$0x1] }
   0xb   :  { %v30_v16 = vrot.slane %v29_v14, 1  ;;  %v39_v17 = vadd.f32 %v38_v15, %v37_v13  ;;  %430 = vmatpush3.bf16.msra.mxu1 %v429_v10  ;;  %v432_v13 = vpack.c.bf16 %v207_v12, %v206_v11  ;;  %v209_v15 = vld [vmem:[%s638_s3 + $0x28] sm:$0xff] }
   0xc   :  { %431 = vmatprep.subr.bf16.mxu1 %v463_v6 }
   0xd   :  { %v31_v18 = vadd.f32 %v30_v16, %v29_v14  ;;  %v40_v19 = vrot.slane %v39_v17, 1  ;;  %412 = vmatpush3.bf16.msra.mxu0 %v411_v31  ;;  %v208_v14 = vld [vmem:[%s638_s3 + $0x20] sm:$0xff]  ;;  %v450_v31 = vpack.c.bf16 %v219_v30, %v218_v29 }
   0xe   :  { %413 = vmatprep.subr.bf16.mxu0 %v463_v6  ;;  %v435_v16 = vpack.c.bf16 %v209_v15, %v208_v14 }
   0xf   :  { %v33_v20 = vmul.f32 0.125, %v31_v18  ;;  %v41_v21 = vadd.f32 %v40_v19, %v39_v17  ;;  %433 = vmatpush3.bf16.msra.mxu1 %v432_v13  ;;  %v210_v17 = vld [vmem:[%s638_s3 + $0x30] sm:$0xff]  ;;  %v211_v18 = vld [vmem:[%s638_s3 + $0x38] sm:$0xff] }
  0x10   :  { %434 = vmatprep.subr.bf16.mxu1 %v463_v6  ;;  %v438_v19 = vpack.c.bf16 %v211_v18, %v210_v17 }
  0x11   :  { %v42_v22 = vmul.f32 0.125, %v41_v21  ;;  %v43_v23 = vmul.f32 %v33_v20, %v33_v20  ;;  %415 = vmatpush3.bf16.msra.mxu0 %v414_v34  ;;  %v213_v21 = vld [vmem:[%s638_s3 + $0x48] sm:$0xff] }
  0x12   :  { %416 = vmatprep.subr.bf16.mxu0 %v463_v6 }
  0x13   :  { %v44_v24 = vsub.f32 %v42_v22, %v43_v23  ;;  %436 = vmatpush3.bf16.msra.mxu1 %v435_v16  ;;  %v214_v23 = vld [vmem:[%s638_s3 + $0x50] sm:$0xff] }
  0x14   :  { %437 = vmatprep.subr.bf16.mxu1 %v463_v6 }
  0x15   :  { %v45_v25 = vmax.f32 %v44_v24, 0.0  ;;  %418 = vmatpush3.bf16.msra.mxu0 %v417_v37  ;;  %v215_v24 = vld [vmem:[%s638_s3 + $0x58] sm:$0xff] }
  0x16   :  { %419 = vmatprep.subr.bf16.mxu0 %v463_v6 }
  0x17   :  { %50 = vperm.xlu0 %456, %v45_v25   ;;  %439 = vmatpush3.bf16.msra.mxu1 %v438_v19  ;;  %v444_v25 = vpack.c.bf16 %v215_v24, %v214_v23 }
  0x18   :  { %440 = vmatprep.subr.bf16.mxu1 %v463_v6 }
  0x19   :  { %421 = vmatpush3.bf16.msra.mxu0 %v420_v40 }
  0x1a   :  { %422 = vmatprep.subr.bf16.mxu0 %v463_v6 }
  0x1b   :  { %59 = vperm.xlu0 %456, %v33_v20   ;;  %v212_v20 = vld [vmem:[%s638_s3 + $0x40] sm:$0xff] }
  0x1c   :  { %v441_v22 = vpack.c.bf16 %v213_v21, %v212_v20 }
  0x1d   :  { %424 = vmatpush3.bf16.msra.mxu0 %v423_v43 }
  0x1e   :  { %425 = vmatprep.subr.bf16.mxu0 %v463_v6  ;;  %442 = vmatpush3.bf16.msra.mxu1 %v441_v22 }
  0x1f   :  { %443 = vmatprep.subr.bf16.mxu1 %v463_v6 }
  0x21   :  { %427 = vmatpush3.bf16.msra.mxu0 %v426_v46 }
  0x22   :  { %445 = vmatpush3.bf16.msra.mxu1 %v444_v25 }
  0x23   :  { %446 = vmatprep.subr.bf16.mxu1 %v463_v6 }
  0x26   :  { %448 = vmatpush3.bf16.msra.mxu1 %v447_v28 }
  0x27   :  { %449 = vmatprep.subr.bf16.mxu1 %v463_v6 }
  0x2a   :  { %451 = vmatpush3.bf16.msra.mxu1 %v450_v31 }
  0x81   :  { %v67_v0 = vpop.permute.xlu1 %66 }
  0x96   :  { %v51_v50 = vpop.permute.xlu0 %50 }
  0x97   :  { %v53_v51 = vmul.f32 %v51_v50, %v47_v49 }
  0x99   :  { %v54_v52 = vadd.f32 1e-05, %v53_v51 }
  0x9a   :  { %v60_v61 = vpop.permute.xlu0 %59 }
  0x9b   :  { %458 = vrsqrt.f32 %v54_v52  ;;  %v21_v52 = vld [vmem:[%s637_s1 + $0x3] sm:$0x1] }
  0xa5   :  { %v459_v58 = vpop.eup %458 }
  0xa6   :  { %v56_v59 = vmul.f32 %v459_v58, %v46_v56 }
  0xa8   :  { %v62_v62 = vmul.f32 %v60_v61, %v56_v59  ;;  %v72_v63 = vrot.slane %v56_v59, %v559_v57 }
  0xaa   :  { %v63_v1 = vsub.f32 %v20_v60, %v62_v62  ;;  %v73_v2 = vmul.f32 %v72_v63, %v67_v0 }
  0xac   :  { %v77_v3 = vrot.slane %v63_v1, %v559_v57  ;;  %v299_v1 = vld [vmem:[%s637_s1 + $0x5] ss:$0 sm:$0xff] }
  0xae   :  { %v78_v4 = vadd.f32 %v77_v3, %v73_v2 }
  0xb0   :  { %vm79_vm2 = vcmp.ge.f32.partialorder %v78_v4, 0.0  ;;  %v80_v5 = vmul.f32 0.1, %v78_v4 }
  0xb2   :  { %v81_v7 = vsel %vm79_vm2, %v78_v4, %v80_v5 }
  0xb3   :  { %367 = vmatmul.mubr.f32.vlgmr.msra.gmra.mrb[0].mxu0 %v81_v7 }
 0x186   :  { %v164_v32 = vpop.f32.mrb[0].mxu0 }
 0x187   :  { %v168_v33 = vrot.slane %v164_v32, 4  ;;  %v175_v34 = vmul.f32 %v164_v32, %v164_v32  ;;  %v368_v35 = vpop.f32.mrb[1].mxu0 }
 0x189   :  { %v169_v36 = vadd.f32 %v168_v33, %v164_v32  ;;  %v176_v37 = vrot.slane %v175_v34, 4 }
 0x18b   :  { %v170_v38 = vrot.slane %v169_v36, 2  ;;  %v177_v39 = vadd.f32 %v176_v37, %v175_v34 }
 0x18d   :  { %v171_v40 = vadd.f32 %v170_v38, %v169_v36  ;;  %v178_v41 = vrot.slane %v177_v39, 2 }
 0x18f   :  { %v172_v42 = vrot.slane %v171_v40, 1  ;;  %v179_v43 = vadd.f32 %v178_v41, %v177_v39 }
 0x191   :  { %v173_v44 = vadd.f32 %v172_v42, %v171_v40  ;;  %v180_v45 = vrot.slane %v179_v43, 1 }
 0x193   :  { %v174_v46 = vmul.f32 0.125, %v173_v44  ;;  %v181_v47 = vadd.f32 %v180_v45, %v179_v43 }
 0x195   :  { %v182_v48 = vmul.f32 0.125, %v181_v47  ;;  %v183_v49 = vmul.f32 %v174_v46, %v174_v46 }
 0x197   :  { %v184_v6 = vsub.f32 %v182_v48, %v183_v49 }
 0x199   :  { %v185_v50 = vmax.f32 %v184_v6, 0.0 }
 0x19b   :  { %v186_v51 = vadd.f32 1e-05, %v185_v50 }
 0x19d   :  { %460 = vrsqrt.f32 %v186_v51 }
 0x1a7   :  { %v461_v53 = vpop.eup %460 }
 0x1a8   :  { %v188_v54 = vmul.f32 %v461_v53, %v21_v52 }
 0x1aa   :  { %v189_v56 = vmul.f32 %v188_v54, %v174_v46  ;;  %v194_v58 = vrot.slane %v188_v54, %v559_v57 }
 0x1ac   :  { %v190_v59 = vsub.f32 %v22_v55, %v189_v56  ;;  %v195_v60 = vmul.f32 %v194_v58, %v164_v32 }
 0x1ae   :  { %v199_v61 = vrot.slane %v190_v59, %v559_v57 }
 0x1b0   :  { %v200_v62 = vadd.f32 %v199_v61, %v195_v60 }
 0x1b2   :  { %vm201_vm3 = vcmp.ge.f32.partialorder %v200_v62, 0.0  ;;  %v202_v63 = vmul.f32 0.1, %v200_v62 }
 0x1b4   :  { %v203_v0 = vsel %vm201_vm3, %v200_v62, %v202_v63 }
 0x1b5   :  { %402 = vmatmul.mubr.f32.vlgmr.msra.gmra.mrb[0].mxu1 %v203_v0 }
 0x288   :  { %v290_v2 = vpop.f32.mrb[0].mxu1 }
 0x289   :  { %v291_v3 = vadd.f32 %v299_v1, %v290_v2  ;;  %v403_v4 = vpop.f32.mrb[1].mxu1 }
 0x28b   :  { %294 = vst [vmem:[%s639_s4] sm:$0xff] %v291_v3 }

</bundles_post_ra>
